<compile_context>
chip_gen: v7x
topology: tpu7x:2x2x1
jax: 0.10.0
libtpu: 0.0.40
codegen_flags: <defaults>
</compile_context>

<pallas_src>
import numpy as np
import jax
import jax.numpy as jnp
from jax import lax
from jax.experimental import pallas as pl
from jax.experimental.pallas import tpu as pltpu

_EPS = 1e-5                     # nn.BatchNorm1d default eps
_MXU_DTYPE = jnp.float32        # set to jnp.bfloat16 for prod speed on v6e/v7x
_VMEM_LIMIT = 48 * 1024 * 1024  # <= v7x's 64 MiB physical VMEM, >> default scoped


def _dot(a, b):
    return jnp.dot(a.astype(_MXU_DTYPE), b.astype(_MXU_DTYPE),
                   preferred_element_type=jnp.float32)


# --------------------------------------------------------------------------
# Pass 1: circular conv (never written to HBM) + per-tile BN partial stats.
# --------------------------------------------------------------------------
def _conv_stats_kernel(x_ref, halo_ref, w_ref, b_ref, stats_ref):
    # x_ref:    (TL, C)   rows [l*TL, (l+1)*TL) of this batch
    # halo_ref: (3, C)    [x[l*TL-2], x[l*TL-1], x[(l+1)*TL]] (circular indices)
    # w_ref:    (3, C, C) taps for x[t-1], x[t], x[t+1]
    # b_ref:    (1, C)
    # stats_ref:(2, C)    row0 = sum(y), row1 = sum((y - tile_mean)^2)
    TL = x_ref.shape[0]
    xt = x_ref[...]
    halo = halo_ref[...]
    row = lax.broadcasted_iota(jnp.int32, xt.shape, 0)

    x_prev = jnp.where(row == 0, halo[1:2, :], pltpu.roll(xt, shift=1, axis=0))
    x_next = jnp.where(row == TL - 1, halo[2:3, :],
                       pltpu.roll(xt, shift=TL - 1, axis=0))

    y = _dot(x_prev, w_ref[0]) + _dot(xt, w_ref[1]) + _dot(x_next, w_ref[2]) \
        + b_ref[...]

    s = jnp.sum(y, axis=0, keepdims=True)                 # (1, C)
    mean_t = s * (1.0 / TL)
    d = y - mean_t
    m2 = jnp.sum(d * d, axis=0, keepdims=True)            # centered second moment
    stats_ref[...] = jnp.concatenate([s, m2], axis=0)


# --------------------------------------------------------------------------
# Pass 2: recompute conv (even/odd row streams) + BN affine + ELU + MaxPool.
# --------------------------------------------------------------------------
def _conv_bn_elu_pool_kernel(x_ref, halo_ref, w_ref, b_ref,
                             scale_ref, shift_ref, o_ref):
    # x_ref: (TL, C), halo_ref: (3, C), w_ref: (3, C, C)
    # b/scale/shift: (1, C), o_ref: (TL//2, C)
    TL, C = x_ref.shape
    H = TL // 2
    halo = halo_ref[...]
    w0, w1, w2 = w_ref[0], w_ref[1], w_ref[2]
    b = b_ref[...]
    scale = scale_ref[...]
    shift = shift_ref[...]

    # Even / odd row streams loaded with stride-2 directly from the input tile.
    x_even = x_ref[pl.ds(0, H, stride=2), :]              # x[2i]
    x_odd = x_ref[pl.ds(1, H, stride=2), :]               # x[2i+1]

    row = lax.broadcasted_iota(jnp.int32, (H, C), 0)
    # x[2i-1]: odd stream shifted down one window; first row from the left halo.
    x_odd_m1 = jnp.where(row == 0, halo[1:2, :],
                         pltpu.roll(x_odd, shift=1, axis=0))
    # x[2i+2]: even stream shifted up one window; last row from the right halo.
    x_even_p1 = jnp.where(row == H - 1, halo[2:3, :],
                          pltpu.roll(x_even, shift=H - 1, axis=0))

    y_even = _dot(x_odd_m1, w0) + _dot(x_even, w1) + _dot(x_odd, w2) + b   # rows 2i
    y_odd = _dot(x_even, w0) + _dot(x_odd, w1) + _dot(x_even_p1, w2) + b   # rows 2i+1

    def bn_elu(y):
        h = y * scale + shift
        return jnp.where(h > 0, h, jnp.expm1(h))           # ELU(alpha=1)

    a_even = bn_elu(y_even)
    a_odd = bn_elu(y_odd)

    # Left neighbour a[2i-1] of each pool window: a_odd shifted down one window;
    # its first row is the activation of the row just left of this tile
    # (conv row l*TL-1, built from halo rows), or -inf for the very first tile
    # (MaxPool1d padding).
    y_left = _dot(halo[0:1, :], w0) + _dot(halo[1:2, :], w1) \
        + _dot(x_even[0:1, :], w2) + b
    a_left = bn_elu(y_left)
    a_left = jnp.where(pl.program_id(1) == 0,
                       jnp.full_like(a_left, -jnp.inf), a_left)
    a_prev = jnp.where(row == 0, a_left, pltpu.roll(a_odd, shift=1, axis=0))

    # pooled[i] = max(a[2i-1], a[2i], a[2i+1]) -> written lane-dense, no scratch.
    o_ref[...] = jnp.maximum(jnp.maximum(a_prev, a_even), a_odd).astype(o_ref.dtype)


def _pick_tile(L, cap=512):
    """Largest L-dividing tile length (multiple of 8, even) up to `cap`."""
    if L <= cap:
        return L
    best = None
    for t in range(8, cap + 1, 8):
        if L % t == 0:
            best = t
    return best if best is not None else L


def conv_layer_forward(x, conv_w, conv_b, gamma, beta, *, tile_len=None):
    """x: (B, L, C) float32.  conv_w: (C_out, C_in, 3) PyTorch layout."""
    B, L, C = x.shape
    assert L % 2 == 0, "even sequence length expected"
    # TODO(synk): odd-L tail pooling window not handled (Informer uses even L).
    if tile_len is None:
        TL = _pick_tile(L)
    else:
        TL = int(tile_len)
        assert L % TL == 0 and TL % 2 == 0
    n_l = L // TL
    H = TL // 2
    L_out = L // 2

    x = x.astype(jnp.float32)
    w_stack = jnp.transpose(conv_w, (2, 1, 0)).astype(jnp.float32)   # (3, C_in, C_out)
    bias = conv_b.reshape(1, C).astype(jnp.float32)

    # Tiny per-tile halo rows (circular): [x[l*TL-2], x[l*TL-1], x[(l+1)*TL]].
    starts = np.arange(n_l) * TL
    hidx = np.stack([(starts - 2) % L, (starts - 1) % L, (starts + TL) % L],
                    axis=1).reshape(-1)
    halo = jnp.take(x, jnp.asarray(hidx), axis=1).reshape(B, n_l, 3, C)

    # ---- Pass 1: conv + partial BN stats (stats only -> negligible HBM write) --
    stats = pl.pallas_call(
        _conv_stats_kernel,
        grid=(B, n_l),
        in_specs=[
            pl.BlockSpec((None, TL, C), lambda b, l: (b, l, 0)),
            pl.BlockSpec((None, None, 3, C), lambda b, l: (b, l, 0, 0)),
            pl.BlockSpec((3, C, C), lambda b, l: (0, 0, 0)),
            pl.BlockSpec((1, C), lambda b, l: (0, 0)),
        ],
        out_specs=pl.BlockSpec((None, None, 2, C), lambda b, l: (b, l, 0, 0)),
        out_shape=jax.ShapeDtypeStruct((B, n_l, 2, C), jnp.float32),
        compiler_params=pltpu.CompilerParams(
            dimension_semantics=("parallel", "parallel"),
            vmem_limit_bytes=_VMEM_LIMIT),
        cost_estimate=pl.CostEstimate(
            flops=2 * B * L * 3 * C * C + 6 * B * L * C,
            transcendentals=0,
            bytes_accessed=4 * (B * L * C + B * n_l * 5 * C + 3 * C * C + C)),
    )(x, halo, w_stack, bias)

    # ---- Glue: Welford-style combine of per-tile (sum, M2) -> BN scale/shift ---
    sums = stats[:, :, 0, :]                               # (B, n_l, C)
    m2s = stats[:, :, 1, :]
    n = jnp.float32(B * L)
    mean = jnp.sum(sums, axis=(0, 1)) / n                  # (C,)
    tile_mean = sums / jnp.float32(TL)
    m2 = jnp.sum(m2s, axis=(0, 1)) \
        + jnp.float32(TL) * jnp.sum((tile_mean - mean) ** 2, axis=(0, 1))
    var = m2 / n                                           # biased var (BN forward)
    inv_std = lax.rsqrt(var + _EPS)
    g = gamma.astype(jnp.float32)
    scale = (g * inv_std).reshape(1, C)
    shift = (beta.astype(jnp.float32) - mean * g * inv_std).reshape(1, C)

    # ---- Pass 2: recompute conv + BN affine + ELU + MaxPool, fully fused -------
    out = pl.pallas_call(
        _conv_bn_elu_pool_kernel,
        grid=(B, n_l),
        in_specs=[
            pl.BlockSpec((None, TL, C), lambda b, l: (b, l, 0)),
            pl.BlockSpec((None, None, 3, C), lambda b, l: (b, l, 0, 0)),
            pl.BlockSpec((3, C, C), lambda b, l: (0, 0, 0)),
            pl.BlockSpec((1, C), lambda b, l: (0, 0)),
            pl.BlockSpec((1, C), lambda b, l: (0, 0)),
            pl.BlockSpec((1, C), lambda b, l: (0, 0)),
        ],
        out_specs=pl.BlockSpec((None, H, C), lambda b, l: (b, l, 0)),
        out_shape=jax.ShapeDtypeStruct((B, L_out, C), jnp.float32),
        compiler_params=pltpu.CompilerParams(
            dimension_semantics=("parallel", "parallel"),
            vmem_limit_bytes=_VMEM_LIMIT),
        cost_estimate=pl.CostEstimate(
            flops=2 * B * L * 3 * C * C + 12 * B * L * C,
            transcendentals=B * L * C,
            bytes_accessed=4 * (B * L * C + B * L_out * C
                                + B * n_l * 3 * C + 3 * C * C + 3 * C)),
    )(x, halo, w_stack, bias, scale, shift)
    return out


def conv_layer_reference(x, conv_w, conv_b, gamma, beta):
    """Pure-JAX reference mirroring the PyTorch module (train-mode BN)."""
    B, L, C = x.shape
    xc = jnp.transpose(x, (0, 2, 1))                                   # (B, C, L)
    xp = jnp.concatenate([xc[:, :, -1:], xc, xc[:, :, :1]], axis=-1)   # circular pad
    y = lax.conv_general_dilated(
        xp, conv_w, window_strides=(1,), padding='VALID',
        dimension_numbers=('NCH', 'OIH', 'NCH')) + conv_b[None, :, None]
    mean = jnp.mean(y, axis=(0, 2), keepdims=True)
    var = jnp.mean((y - mean) ** 2, axis=(0, 2), keepdims=True)
    h = (y - mean) / jnp.sqrt(var + _EPS) * gamma[None, :, None] + beta[None, :, None]
    a = jnp.where(h > 0, h, jnp.expm1(h))
    ap = jnp.pad(a, ((0, 0), (0, 0), (1, 1)), constant_values=-jnp.inf)
    L_out = (L - 1) // 2 + 1
    pooled = jnp.stack([jnp.max(ap[:, :, 2 * i:2 * i + 3], axis=-1)
                        for i in range(L_out)], axis=-1)
    return jnp.transpose(pooled, (0, 2, 1))                            # (B, L_out, C)


if __name__ == "__main__":
    # TODO(synk): BatchNorm running-stat buffer updates (training side effect) are
    # not materialized; only the forward output is reproduced.
    key = jax.random.PRNGKey(0)
    kx, kw, kb, kg, kbeta, kx2 = jax.random.split(key, 6)

    # --- main check: toy ConvLayer shapes (single L tile) ---
    B, L, C = 2, 16, 4
    x = jax.random.normal(kx, (B, L, C), dtype=jnp.float32)
    conv_w = jax.random.normal(kw, (C, C, 3), dtype=jnp.float32) * (1.0 / np.sqrt(3 * C))
    conv_b = jax.random.normal(kb, (C,), dtype=jnp.float32) * 0.1
    gamma = 1.0 + 0.1 * jax.random.normal(kg, (C,), dtype=jnp.float32)
    beta = 0.1 * jax.random.normal(kbeta, (C,), dtype=jnp.float32)

    out = jax.block_until_ready(conv_layer_forward(x, conv_w, conv_b, gamma, beta))
    ref = conv_layer_reference(x, conv_w, conv_b, gamma, beta)
    np.testing.assert_allclose(np.asarray(out), np.asarray(ref), rtol=1e-4, atol=1e-4)
    assert out.shape == (B, L // 2, C)

    # --- tiled check: exercises the L-tiling / halo path (n_tiles > 1) ---
    L2 = 32
    x2 = jax.random.normal(kx2, (B, L2, C), dtype=jnp.float32)
    out2 = jax.block_until_ready(
        conv_layer_forward(x2, conv_w, conv_b, gamma, beta, tile_len=16))
    ref2 = conv_layer_reference(x2, conv_w, conv_b, gamma, beta)
    np.testing.assert_allclose(np.asarray(out2), np.asarray(ref2), rtol=1e-4, atol=1e-4)
    assert out2.shape == (B, L2 // 2, C)

    print("KERNEL_OK")
</pallas_src>

<mosaic_0001>
module attributes {stable_mosaic.version = 11 : i64} {
  func.func @_conv_stats_kernel(%arg0: i32, %arg1: i32, %arg2: memref<1x16x4xf32, #tpu.memory_space<vmem>>, %arg3: memref<1x1x3x4xf32, #tpu.memory_space<vmem>>, %arg4: memref<3x4x4xf32, #tpu.memory_space<vmem>>, %arg5: memref<1x4xf32, #tpu.memory_space<vmem>>, %arg6: memref<1x1x2x4xf32, #tpu.memory_space<vmem>>) attributes {dimension_semantics = [#tpu.dimension_semantics<parallel>, #tpu.dimension_semantics<parallel>], iteration_bounds = array<i64: 2, 1>, scalar_prefetch = 0 : i64, scratch_operands = 0 : i64, tpu.core_type = #tpu.core_type<tc>, window_params = [{transform_indices = @transform_0, window_bounds = array<i64: 1, 16, 4>}, {transform_indices = @transform_1, window_bounds = array<i64: 1, 1, 3, 4>}, {pipeline_mode = #tpu.pipeline_mode<synchronous>, transform_indices = @transform_2, window_bounds = array<i64: 3, 4, 4>}, {pipeline_mode = #tpu.pipeline_mode<synchronous>, transform_indices = @transform_3, window_bounds = array<i64: 1, 4>}, {transform_indices = @transform_4, window_bounds = array<i64: 1, 1, 2, 4>}]} {
    %c0 = arith.constant 0 : index
    %c0_0 = arith.constant 0 : index
    %c0_1 = arith.constant 0 : index
    %0 = vector.load %arg2[%c0, %c0_0, %c0_1] : memref<1x16x4xf32, #tpu.memory_space<vmem>>, vector<1x16x4xf32>
    %1 = vector.shape_cast %0 : vector<1x16x4xf32> to vector<16x4xf32>
    %c0_2 = arith.constant 0 : index
    %c0_3 = arith.constant 0 : index
    %c0_4 = arith.constant 0 : index
    %c0_5 = arith.constant 0 : index
    %2 = vector.load %arg3[%c0_2, %c0_3, %c0_4, %c0_5] : memref<1x1x3x4xf32, #tpu.memory_space<vmem>>, vector<1x1x3x4xf32>
    %3 = vector.shape_cast %2 : vector<1x1x3x4xf32> to vector<3x4xf32>
    %4 = tpu.iota {dimensions = array<i32: 0>} : vector<16x4xi32>
    %c0_i32 = arith.constant 0 : i32
    %5 = vector.broadcast %c0_i32 : i32 to vector<16x4xi32>
    %6 = arith.cmpi eq, %4, %5 : vector<16x4xi32>
    %7 = vector.extract_strided_slice %3 {offsets = [1, 0], sizes = [1, 4], strides = [1, 1]} : vector<3x4xf32> to vector<1x4xf32>
    %c1_i32 = arith.constant 1 : i32
    %8 = tpu.dynamic_rotate %1 by %c1_i32 dim 0 : vector<16x4xf32>, i32 -> vector<16x4xf32>
    %9 = vector.shape_cast %7 : vector<1x4xf32> to vector<1x4xf32>
    %10 = vector.broadcast %9 : vector<1x4xf32> to vector<16x4xf32>
    %11 = arith.select %6, %10, %8 : vector<16x4xi1>, vector<16x4xf32>
    %c15_i32 = arith.constant 15 : i32
    %12 = vector.broadcast %c15_i32 : i32 to vector<16x4xi32>
    %13 = arith.cmpi eq, %4, %12 : vector<16x4xi32>
    %14 = vector.extract_strided_slice %3 {offsets = [2, 0], sizes = [1, 4], strides = [1, 1]} : vector<3x4xf32> to vector<1x4xf32>
    %c15_i32_6 = arith.constant 15 : i32
    %15 = tpu.dynamic_rotate %1 by %c15_i32_6 dim 0 : vector<16x4xf32>, i32 -> vector<16x4xf32>
    %16 = vector.shape_cast %14 : vector<1x4xf32> to vector<1x4xf32>
    %17 = vector.broadcast %16 : vector<1x4xf32> to vector<16x4xf32>
    %18 = arith.select %13, %17, %15 : vector<16x4xi1>, vector<16x4xf32>
    %c0_7 = arith.constant 0 : index
    %c0_8 = arith.constant 0 : index
    %c0_9 = arith.constant 0 : index
    %19 = vector.load %arg4[%c0_7, %c0_8, %c0_9] : memref<3x4x4xf32, #tpu.memory_space<vmem>>, vector<1x4x4xf32>
    %20 = vector.shape_cast %19 : vector<1x4x4xf32> to vector<4x4xf32>
    %cst = arith.constant dense<0.000000e+00> : vector<16x4xf32>
    %21 = tpu.matmul %11, %20, %cst {dimension_numbers = #tpu.dot_dimension_numbers<[1], [0], [0], [1], [0, 0, 1, 1], [], []>} : vector<16x4xf32>, vector<4x4xf32>, vector<16x4xf32> -> vector<16x4xf32>
    %c1 = arith.constant 1 : index
    %c0_10 = arith.constant 0 : index
    %c0_11 = arith.constant 0 : index
    %22 = vector.load %arg4[%c1, %c0_10, %c0_11] : memref<3x4x4xf32, #tpu.memory_space<vmem>>, vector<1x4x4xf32>
    %23 = vector.shape_cast %22 : vector<1x4x4xf32> to vector<4x4xf32>
    %cst_12 = arith.constant dense<0.000000e+00> : vector<16x4xf32>
    %24 = tpu.matmul %1, %23, %cst_12 {dimension_numbers = #tpu.dot_dimension_numbers<[1], [0], [0], [1], [0, 0, 1, 1], [], []>} : vector<16x4xf32>, vector<4x4xf32>, vector<16x4xf32> -> vector<16x4xf32>
    %25 = arith.addf %21, %24 : vector<16x4xf32>
    %c2 = arith.constant 2 : index
    %c0_13 = arith.constant 0 : index
    %c0_14 = arith.constant 0 : index
    %26 = vector.load %arg4[%c2, %c0_13, %c0_14] : memref<3x4x4xf32, #tpu.memory_space<vmem>>, vector<1x4x4xf32>
    %27 = vector.shape_cast %26 : vector<1x4x4xf32> to vector<4x4xf32>
    %cst_15 = arith.constant dense<0.000000e+00> : vector<16x4xf32>
    %28 = tpu.matmul %18, %27, %cst_15 {dimension_numbers = #tpu.dot_dimension_numbers<[1], [0], [0], [1], [0, 0, 1, 1], [], []>} : vector<16x4xf32>, vector<4x4xf32>, vector<16x4xf32> -> vector<16x4xf32>
    %29 = arith.addf %25, %28 : vector<16x4xf32>
    %c0_16 = arith.constant 0 : index
    %c0_17 = arith.constant 0 : index
    %30 = vector.load %arg5[%c0_16, %c0_17] : memref<1x4xf32, #tpu.memory_space<vmem>>, vector<1x4xf32>
    %31 = vector.broadcast %30 : vector<1x4xf32> to vector<16x4xf32>
    %32 = arith.addf %29, %31 : vector<16x4xf32>
    %cst_18 = arith.constant dense<0.000000e+00> : vector<4xf32>
    %33 = vector.multi_reduction <add>, %32, %cst_18 [0] : vector<16x4xf32> to vector<4xf32>
    %34 = vector.shape_cast %33 : vector<4xf32> to vector<1x4xf32>
    %cst_19 = arith.constant 6.250000e-02 : f32
    %35 = vector.broadcast %cst_19 : f32 to vector<1x4xf32>
    %36 = arith.mulf %34, %35 : vector<1x4xf32>
    %37 = vector.broadcast %36 : vector<1x4xf32> to vector<16x4xf32>
    %38 = arith.subf %32, %37 : vector<16x4xf32>
    %39 = arith.mulf %38, %38 : vector<16x4xf32>
    %cst_20 = arith.constant dense<0.000000e+00> : vector<4xf32>
    %40 = vector.multi_reduction <add>, %39, %cst_20 [0] : vector<16x4xf32> to vector<4xf32>
    %41 = vector.shape_cast %40 : vector<4xf32> to vector<1x4xf32>
    %42 = tpu.concatenate %34, %41 in 0 : vector<1x4xf32>, vector<1x4xf32> -> vector<2x4xf32>
    %c0_21 = arith.constant 0 : index
    %c0_22 = arith.constant 0 : index
    %c0_23 = arith.constant 0 : index
    %c0_24 = arith.constant 0 : index
    %43 = vector.load %arg6[%c0_21, %c0_22, %c0_23, %c0_24] : memref<1x1x2x4xf32, #tpu.memory_space<vmem>>, vector<1x1x2x4xf32>
    %44 = vector.shape_cast %43 : vector<1x1x2x4xf32> to vector<2x4xf32>
    %45 = vector.shape_cast %42 : vector<2x4xf32> to vector<1x1x2x4xf32>
    tpu.vector_store %arg6[%c0_21, %c0_22, %c0_23, %c0_24], %45 {strides = array<i32>} : memref<1x1x2x4xf32, #tpu.memory_space<vmem>>, vector<1x1x2x4xf32>,
    return
  }
  func.func @transform_0(%arg0: i32, %arg1: i32) -> (i32, i32, i32) {
    %c0_i32 = arith.constant 0 : i32
    %c0_i32_0 = arith.constant 0 : i32
    return %arg0, %arg1, %c0_i32 : i32, i32, i32
  }
  func.func @transform_1(%arg0: i32, %arg1: i32) -> (i32, i32, i32, i32) {
    %c0_i32 = arith.constant 0 : i32
    %c0_i32_0 = arith.constant 0 : i32
    %c0_i32_1 = arith.constant 0 : i32
    return %arg0, %arg1, %c0_i32, %c0_i32_0 : i32, i32, i32, i32
  }
  func.func @transform_2(%arg0: i32, %arg1: i32) -> (i32, i32, i32) {
    %c0_i32 = arith.constant 0 : i32
    %c0_i32_0 = arith.constant 0 : i32
    %c0_i32_1 = arith.constant 0 : i32
    %c0_i32_2 = arith.constant 0 : i32
    return %c0_i32, %c0_i32_0, %c0_i32_1 : i32, i32, i32
  }
  func.func @transform_3(%arg0: i32, %arg1: i32) -> (i32, i32) {
    %c0_i32 = arith.constant 0 : i32
    %c0_i32_0 = arith.constant 0 : i32
    %c0_i32_1 = arith.constant 0 : i32
    return %c0_i32, %c0_i32_0 : i32, i32
  }
  func.func @transform_4(%arg0: i32, %arg1: i32) -> (i32, i32, i32, i32) {
    %c0_i32 = arith.constant 0 : i32
    %c0_i32_0 = arith.constant 0 : i32
    %c0_i32_1 = arith.constant 0 : i32
    return %arg0, %arg1, %c0_i32, %c0_i32_0 : i32, i32, i32, i32
  }
}

</mosaic_0001>

<bundles_post_ra>
// kernel: tpu_custom_call.1
= control target key start
LH: loop header
LB: loop body
LE: loop exit
PB: predicated region body
PF: predicated region fallthrough
CT: control target
= control target key end

     0   :  { %9 = vsyncpa [#allocation3], 0  ;;  %s1047_s0 = inlined_call_operand.vmem [shape: f32[2,16,4], index: 0, kind: input, shape index: {}]   ;;  %s1048_s1 = inlined_call_operand.vmem [shape: f32[2,1,3,4], index: 1, kind: input, shape index: {}]   ;;  %s1049_s2 = inlined_call_operand.vmem [shape: f32[3,4,4], index: 2, kind: input, shape index: {}]   ;;  %s1050_s3 = inlined_call_operand.vmem [shape: f32[1,4], index: 3, kind: input, shape index: {}]   ;;  %s1051_s4 = inlined_call_operand.hbm [shape: f32[2,1,2,4], index: 4, kind: output, shape index: {}]  }
   0x1   :  { %11 = vsyncpa [#allocation3 + $0x1], 0  ;;  %s902_s15 = smov 0   ;;  %s904_s16 = smov 0  }
   0x2   :  { %s906_s17 = smov 0   ;;  %s908_s18 = smov 0  }
   0x3   :  { %s910_s19 = smov 0   ;;  %s912_s20 = smov 0  }
   0x4 LB: > { %s687_s21 = sadd.s32 4294967295, %s874_s20   ;;  %s688_s22 = sadd.s32 4294967294, %s874_s20   ;;  %s874_s20 = sphi %s912_s20, %s17_s20   ;;  %s870_s19 = sphi %s910_s19, %s1058_s19   ;;  %s866_s18 = sphi %s908_s18, %s1057_s18   ;;  %s862_s17 = sphi %s906_s17, %s1056_s17   ;;  %s858_s16 = sphi %s904_s16, %s1055_s16   ;;  %s854_s15 = sphi %s902_s15, %s1054_s15  }
   0x5   : > { %s29_s23 = sadd.s32 1, %s870_s19  ;;  %s136_s24 = sadd.s32 1, %s862_s17 }
   0x6   : > { %p31_p0 = scmp.ge.s32.totalorder %s29_s23, 2  ;;  %p146_p1 = scmp.ne.s32.totalorder %s862_s17, %s858_s16 }
   0x7   : > { %p147_p2 = scmp.eq.s32.totalorder %s687_s21, 1  ;;  %p152_p3 = scmp.ne.s32.totalorder %s858_s16, %s854_s15 }
   0x8   : > { %s1060_s23 = smov (%p31_p0, %s29_s23), 0  ;;  %p153_p5 = scmp.eq.s32.totalorder %s688_s22, 1 }
   0x9   : > { %p942_p4 = por %p147_p2, %p146_p1  ;;  %s131_s26 = ssub.s32 %s870_s19, %s1060_s23 }
   0xa   : > { %p691_p6 = scmp.ge.s32.totalorder %s874_s20, 1  ;;  %p134_p7 = scmp.eq.s32.totalorder %s131_s26, 0 }
   0xb   : > { %p949_p8 = por %p153_p5, %p152_p3  ;;  %p200_p9 = scmp.lt.s32.totalorder %s874_s20, 3 }
   0xc   : > { %s955_s28 = scalar_select %p134_p7, %s862_s17, %s136_s24  }
   0xd   : > { %p201_p10 = pnand %p691_p6, %p200_p9 }
   0xe   : > { %v286_v0 = vld [vmem:[%s1049_s2] sm:$0xf] (!%p201_p10)  ;;  %vm296_vm0 = vcmask (!%p201_p10), 1043456   ;;  %p238_p11 = scmp.lt.s32.totalorder (!%p201_p10), %s866_s18, 1  ;;  %v257_v1 = vlaneseq (!%p201_p10)  ;;  %v703_v2 = vld [vmem:[%s1049_s2 + $0x8] sm:$0xf] (!%p201_p10) }
   0xf   : > { %204 = sbr.rel (%p201_p10) target bundleno = 308 (0x134), region = 36  ;;  %727 = vmatprep.subr.msk.mxu0 (!%p201_p10), %vm296_vm0, %v286_v0  ;;  %v696_v3 = vld [vmem:[%s1049_s2 + $0x4] sm:$0xf] (!%p201_p10)  ;;  %vm289_vm1 = vcmask (!%p201_p10), 31744   ;;  %v707_v26 = vld [vmem:[%s1050_s3] ss:$0 sm:$0xff] (!%p201_p10) }
  0x10   : > { %728 = vmatpush3.msk.msra.mxu0 (!%p201_p10), %vm296_vm0, %v286_v0  ;;  %v258_v4 = vshrl.u32 (!%p201_p10), %v257_v1, 7  ;;  %722 = vmatprep.subr.msk.mxu1 (!%p201_p10), %vm296_vm0, %v696_v3  ;;  %s234_s30 = sand.u32 (!%p201_p10), 1, %s858_s16   ;;  %s709_s6 = sshll.u32 (!%p201_p10), %s866_s18, 5  ;;  %vm579_vm6 = vcmask (!%p201_p10), 1040384   ;;  %vm581_vm7 = vcmask (!%p201_p10), 25600  }
  0x11   : > { %732 = vmatprep.subr.msk.mxu0 (!%p201_p10), %vm296_vm0, %v703_v2  ;;  %723 = vmatpush3.msk.msra.mxu1 (!%p201_p10), %vm296_vm0, %v696_v3  ;;  %s692_s5 = sshll.u32 (!%p201_p10), %s234_s30, 1  ;;  %s584_s12 = scalar_lea.sflag (!%p201_p10), [#allocation3], %s234_s30 }
  0x12   : > { %v269_v5 = vsub.s32 (!%p201_p10), 1, %v258_v4  ;;  %vm260_vm2 = vcmp.eq.s32.totalorder (!%p201_p10), %v258_v4, 0  ;;  %vm264_vm3 = vcmp.lt.s32.totalorder (!%p201_p10), %v258_v4, 1  ;;  %vm277_vm4 = vcmp.lt.s32.totalorder (!%p201_p10), %v258_v4, 7  ;;  %s236_s7 = scalar_lea.vmem (!%p201_p10), [#allocation2], %s692_s5 }
  0x13   : > { %v282_v15 = vsub.s32 (!%p201_p10), 2, %v258_v4  ;;  %v259_v19 = vadd.s32 (!%p201_p10), 8, %v258_v4  ;;  %s598_s8 = sshll.u32 (!%p201_p10), %s236_s7, 4  ;;  %s1002_s8 = int_to_ptr.vmem [resolvable:$true] %s598_s8 }
  0x14   : > { %s796_s13 = scalar_lea.vmem (!%p201_p10), %s1002_s8, 32 }
  0x15   : > { %vm274_vm5 = vcmp.eq.s32.totalorder (!%p201_p10), %v259_v19, 15  ;;  %p797_p12 = scmp.ne.s32.totalorder (!%p201_p10), %s1002_s8, %s796_s13 }
  0x16   : > { %s239_s9 = scalar_select %p238_p11, %s866_s18, 1 }
  0x17   : > { %p798_p13 = pnand %p797_p12, %p942_p4  ;;  %s876_s18 = smov [#allocation2]  }
  0x18   : > { %s712_s10 = sshll.u32 %s239_s9, 4  ;;  %s695_s11 = sshll.u32 %s239_s9, 2 }
  0x19   : > { %s245_s14 = scalar_lea.vmem %s1047_s0, %s712_s10  ;;  %s253_s24 = scalar_lea.vmem %s1048_s1, %s695_s11 }
  0x1a   : > { %v254_v6 = vld [vmem:[%s245_s14] sm:$0xff]  ;;  %v255_v7 = vld [vmem:[%s245_s14 + $0x8] sm:$0xff]  ;;  %s1000_s11 = scalar_lea.hbm %s1051_s4, %s709_s6  ;;  %p799_p0 = pneg %p798_p13 }
  0x1b   : > { %v256_v8 = vld [vmem:[%s253_s24] sm:$0x7]  ;;  %v262_v9 = vrot.slane %v254_v6, 7  ;;  %v263_v10 = vrot.slane %v255_v7, 7  ;;  %724 = vmatprep.mubr.msk.f32.mxu1 %vm289_vm1, %v254_v6  ;;  %v275_v12 = vrot.slane %v254_v6, 1  ;;  %v276_v13 = vrot.slane %v255_v7, 1 }
  0x1c   : > { %v270_v11 = vrot.slane %v256_v8, %v269_v5  ;;  %725 = vmatmul.mubr.msk.f32.vlgmr.msra.gmra.mrb[0].mxu1 %vm289_vm1, %v255_v7  ;;  %v283_v20 = vrot.slane %v256_v8, %v282_v15  ;;  %s800_s14 = sshll.u32 %s876_s18, 4  ;;  %s801_s14 = int_to_ptr.vmem [resolvable:$false] %s800_s14 }
  0x1d   : > { %v266_v14 = vsel %vm264_vm3, %v263_v10, %v262_v9  ;;  %v265_v16 = vsel %vm264_vm3, %v262_v9, %v263_v10  ;;  %v278_v18 = vsel %vm277_vm4, %v275_v12, %v276_v13  ;;  %v279_v21 = vsel %vm277_vm4, %v276_v13, %v275_v12  ;;  %s802_s21 = scalar_lea.vmem %s801_s14, 64  ;;  %p803_p1 = scmp.lt.s32.totalorder %s1002_s8, %s801_s14 }
  0x1e   : > { %v271_v17 = vsel %vm260_vm2, %v270_v11, %v266_v14  ;;  %v285_v22 = vsel %vm274_vm5, %v283_v20, %v279_v21  ;;  %p804_p2 = scmp.lt.s32.totalorder %s802_s21, %s796_s13 }
  0x1f   : > { %729 = vmatprep.mubr.msk.f32.mxu0 %vm289_vm1, %v271_v17 }
  0x20   : > { %730 = vmatmul.mubr.msk.f32.vlgmr.msra.gmra.mrb[0].mxu0 %vm289_vm1, %v265_v16  ;;  %p805_p3 = por %p804_p2, %p803_p1 }
  0x21   : > { %733 = vmatpush3.msk.msra.mxu0 %vm296_vm0, %v703_v2  ;;  %734 = vmatprep.mubr.msk.f32.mxu0 %vm289_vm1, %v278_v18 }
  0x22   : > { %p806_p5 = pnand %p805_p3, %p799_p0 }
  0x28   : > { %735 = vmatmul.mubr.msk.f32.vlgmr.msra.gmra.mrb[0].mxu0 %vm289_vm1, %v285_v22 }
  0xef   : > { %v726_v23 = vpop.f32.mrb[0].mxu1 }
  0xf0   : > { %v366_v24 = vpop.f32.mrb[1].mxu1 }
  0xfb   : > { %v736_v25 = vpop.f32.mrb[0].mxu0 }
  0xfc   : > { %v737_v27 = vadd.f32 %v736_v25, %v726_v23  ;;  %v536_v28 = vpop.f32.mrb[1].mxu0 }
  0xfd   : > { %v738_v29 = vadd.f32 %v536_v28, %v366_v24 }
  0xfe   : > { %v555_v30 = vadd.f32 %v737_v27, %v707_v26 }
  0xff   : > { %v554_v31 = vadd.f32 %v738_v29, %v707_v26 }
 0x100   : > { %v557_v32 = vsel %vm289_vm1, %v555_v30, 0.0 }
 0x101   : > { %v556_v33 = vsel %vm289_vm1, %v554_v31, 0.0 }
 0x102   : > { %v558_v34 = vadd.f32 %v557_v32, %v556_v33 }
 0x104   : > { %v559_v35 = vrot.slane %v558_v34, 4 }
 0x106   : > { %v560_v36 = vadd.f32 %v559_v35, %v558_v34 }
 0x108   : > { %v561_v37 = vrot.slane %v560_v36, 2 }
 0x10a   : > { %v562_v38 = vadd.f32 %v561_v37, %v560_v36 }
 0x10c   : > { %v563_v39 = vrot.slane %v562_v38, 1 }
 0x10e   : > { %v564_v40 = vadd.f32 %v563_v39, %v562_v38 }
 0x110   : > { %v565_v41 = vmul.f32 0.0625, %v564_v40 }
 0x112   : > { %v566_v42 = vsub.f32 %v554_v31, %v565_v41  ;;  %v567_v43 = vsub.f32 %v555_v30, %v565_v41 }
 0x114   : > { %v568_v44 = vmul.f32 %v566_v42, %v566_v42  ;;  %v569_v45 = vmul.f32 %v567_v43, %v567_v43 }
 0x116   : > { %v570_v46 = vsel %vm289_vm1, %v568_v44, 0.0  ;;  %v571_v47 = vsel %vm289_vm1, %v569_v45, 0.0 }
 0x117   : > { %v572_v48 = vadd.f32 %v571_v47, %v570_v46 }
 0x119   : > { %v573_v49 = vrot.slane %v572_v48, 4 }
 0x11b   : > { %v574_v50 = vadd.f32 %v573_v49, %v572_v48 }
 0x11d   : > { %v575_v51 = vrot.slane %v574_v50, 2 }
 0x11f   : > { %v576_v52 = vadd.f32 %v575_v51, %v574_v50 }
 0x121   : > { %v577_v53 = vrot.slane %v576_v52, 1 }
 0x123   : > { %v578_v54 = vadd.f32 %v577_v53, %v576_v52 }
 0x125   : > { %v580_v55 = vsel %vm579_vm6, %v564_v40, %v578_v54 }
 0x126   : > { %582 = vst.msk [vmem:[%s236_s7] sm:$0x3] %vm581_vm7, %v580_v55 }
 0x127   : > { %809 = shalt.err (!%p806_p5)
}
 0x128   : > { %s810_s22 = scalar_lea.hbm %s1000_s11, 32  ;;  %s814_s29 = scalar_lea.hbm %s1051_s4, 64 }
 0x129   : > { %p811_p6 = scmp.ne.s32.totalorder %s1000_s11, %s810_s22  ;;  %p815_p10 = scmp.lt.u32.totalorder %s1000_s11, %s1051_s4 }
 0x12a   : > { %p816_p11 = scmp.lt.u32.totalorder %s814_s29, %s810_s22  ;;  %p818_p13 = scmp.lt.u32.totalorder %s810_s22, %s1000_s11 }
 0x12b   : > { %p812_p7 = pnand %p811_p6, %p942_p4 }
 0x12c   : > { %p817_p12 = por %p816_p11, %p815_p10 }
 0x12d   : > { %p813_p9 = pneg %p812_p7 }
 0x12e   : > { %p819_p0 = por %p818_p13, %p817_p12 }
 0x130   : > { %p820_p1 = pnand %p819_p0, %p813_p9 }
 0x132   : > { %823 = shalt.err (!%p820_p1)
}
 0x133   : > { %741 = dma.vmem_to_hbm [thread:$0]  (%p942_p4), %s1002_s8, 32, %s1000_s11, %s584_s12  }
 0x134 PF: > { %p747_p2 = scmp.ge.s32.totalorder %s874_s20, 2  ;;  %s610_s6 = sand.u32 1, %s854_s15  }
 0x135   : > { %s611_s7 = scalar_lea.sflag [#allocation3], %s610_s6 }
 0x136   : > { %p744_p3 = pnand %p747_p2, %p949_p8 }
 0x138   : > { %849 = dma.done.wait (!%p744_p3), %s611_s7, 32  }
 0x139   : > { %851 = vsyncadd (!%p744_p3), %s611_s7, 4294967264  ;;  %s17_s20 = sadd.s32 1, %s874_s20   ;;  %s1054_s15 = smov %s858_s16 }
 0x13a   : > { %p14_p5 = scmp.ge.s32.totalorder %s17_s20, 4   ;;  %s1055_s16 = smov %s862_s17 }
 0x13b   : > { %s1056_s17 = smov %s955_s28  ;;  %s1057_s18 = smov %s870_s19 }
 0x13c   : > { %s1058_s19 = smov %s1060_s23  ;;  %16 = sbr.rel (!%p14_p5) target bundleno = 4 (0x4), region = 76 }
 0x143   :  { %616 = vsyncpa [#allocation3], 1 }
 0x144   :  { %618 = vsyncpa [#allocation3 + $0x1], 1 }

</bundles_post_ra>
